<compile_context>
chip_gen: v7x
topology: tpu7x:2x2x1
jax: 0.10.0
libtpu: 0.0.40
codegen_flags: <defaults>
</compile_context>

<pallas_src>
import functools

import numpy as np
import jax
import jax.numpy as jnp
from jax.experimental import pallas as pl
from jax.experimental.pallas import tpu as pltpu


def _bwt_kernel(sel_ref, x_ref, o_ref, *, W, W2, LW, cdt):
    # sel_ref: (2*LW, 2*LW)  = [0.5*(E+O) | 0.5*(O-E)]  (E/O pick even/odd cols)
    # x_ref  : (1, TC, TH2, 2W)  super-rows: [even row | odd row]
    # o_ref  : (1, 8, TC, TH2, W2)
    tc, th2 = x_ref.shape[1], x_ref.shape[2]
    rows = tc * th2
    xv = x_ref[0].astype(cdt).reshape(rows, 2 * W)   # free sublane merge (th2%8==0 fast path)
    xe = xv[:, :W]                                   # even input rows, cols interleaved
    xo = xv[:, W:]                                   # odd  input rows, cols interleaved
    s2 = xe + xo          # even lanes: 2*(x1+x2) ; odd lanes: 2*(x3+x4)   (scale folded in sel)
    d2 = xe - xo          # even lanes: 2*(x1-x2) ; odd lanes: 2*(x3-x4)
    sel = sel_ref[...]
    odt = o_ref.dtype
    nblk = W2 // LW

    for m in range(nblk):                            # static unrolled; K = 2*LW per matmul
        lo = 2 * LW * m
        sp = jnp.dot(s2[:, lo:lo + 2 * LW], sel, preferred_element_type=jnp.float32)
        dp = jnp.dot(d2[:, lo:lo + 2 * LW], sel, preferred_element_type=jnp.float32)
        ll = sp[:, :LW]       #  x1 + x2 + x3 + x4   (x_LL)
        hl = sp[:, LW:]       # -x1 - x2 + x3 + x4   (x_HL)
        ld = dp[:, :LW]       #  x1 - x2 + x3 - x4   (x_LD)
        lv = dp[:, LW:]       # -x1 + x2 + x3 - x4   (x_LV)

        def put(k, v):
            v3 = v.reshape(tc, th2, LW).astype(odt)
            if nblk == 1:
                o_ref[0, k] = v3
            else:
                o_ref[0, k, :, :, pl.ds(LW * m, LW)] = v3

        put(0, ll)      # x_LL
        put(1, hl)      # x_HL
        put(2, -ld)     # x_LH = -x_LD
        put(3, -lv)     # x_HH = -x_LV
        put(4, -hl)     # x_HD = -x_HL
        put(5, lv)      # x_LV
        put(6, ld)      # x_LD
        put(7, -ll)     # x_HV = -x_LL


def _make_sel(LW, dtype):
    """(2*LW, 2*LW) chunk-local selection matrix: cols [0,LW) pick 0.5*(even+odd)
    input lanes; cols [LW,2*LW) pick 0.5*(odd-even)."""
    i = np.arange(2 * LW)[:, None]
    j = np.arange(LW)[None, :]
    even = (i == 2 * j).astype(np.float32)
    odd = (i == 2 * j + 1).astype(np.float32)
    plus = 0.5 * (even + odd)
    minus = 0.5 * (odd - even)
    return jnp.asarray(np.concatenate([plus, minus], axis=1), dtype=dtype)


def _vmem_capacity_bytes():
    try:
        info = pltpu.get_tpu_info()
        for name in ("vmem_capacity_bytes", "vmem_size_bytes", "vmem_bytes"):
            cap = getattr(info, name, None)
            if cap:
                return int(cap)
    except Exception:
        pass
    return 64 * 1024 * 1024   # conservative default: v7x per-TensorCore VMEM


def _plan(B, C, H2, W, W2, LW, in_item, out_item, cs):
    """Choose channels-per-step (TC), H2 split (NH) and vmem_limit_bytes,
    sized against this generation's VMEM and counting double-buffered blocks
    plus in-kernel temporaries (cast copy, s/d, live f32 matmul halves)."""
    cap = _vmem_capacity_bytes()
    pad_l = lambda n: -(-n // 128) * 128
    pad_s = lambda n: -(-n // 8) * 8
    sel_bytes = 2 * pad_s(2 * LW) * pad_l(2 * LW) * cs
    budget = max(int(0.55 * cap) - sel_bytes - (2 << 20), 1 << 20)

    def per_chan(th2):
        in_blk = pad_s(th2) * pad_l(2 * W) * in_item               # input block
        out_blk = 8 * pad_s(th2) * pad_l(W2) * out_item            # output block
        temps = pad_s(th2) * (pad_l(2 * W) * cs                    # cast copy of x
                              + 2 * pad_l(W) * cs                  # s2, d2
                              + 6 * pad_l(2 * LW) * 4)             # live f32 matmul/negate temps
        return 2 * (in_blk + out_blk) + temps                      # blocks double-buffered

    tc = max(1, min(C, budget // max(per_chan(H2), 1)))
    while C % tc:
        tc -= 1

    # Split H2: (a) if even one channel overflows the budget, (b) to keep >=2
    # grid steps so both v7x TensorCores get work on tiny batch/channel counts.
    nh = 1
    can_split = lambda n: H2 % (2 * n) == 0 and (H2 // (2 * n)) % 8 == 0
    while tc * per_chan(H2 // nh) > budget and can_split(nh):
        nh *= 2
    if B * (C // tc) * nh < 2:
        if C > 1:
            for cand in range(tc - 1, 0, -1):
                if C % cand == 0:
                    tc = cand
                    break
        if B * (C // tc) * nh < 2 and can_split(nh):
            nh *= 2

    vmem_limit = int(min(0.9 * cap, 100 * 1024 * 1024))
    return tc, nh, vmem_limit


def bwt(x):
    """BWT forward. x: (B, C, H, W) -> (B, 8*C, H//2, W//2)."""
    B, C, H, W = x.shape
    assert H % 2 == 0 and W % 2 == 0, "BWT requires even spatial dims"
    if not jnp.issubdtype(x.dtype, jnp.floating):
        x = x.astype(jnp.float32)            # match torch's int/2 -> float semantics
    H2, W2 = H // 2, W // 2

    # Keep bf16 inputs in bf16 (native MXU rate, half the VMEM); f16/others -> f32.
    cdt = x.dtype if x.dtype in (jnp.dtype(jnp.float32), jnp.dtype(jnp.bfloat16)) \
        else jnp.float32
    cs = jnp.dtype(cdt).itemsize
    # Chunk width of the column de-interleave (bounds matmul K at 2*LW).
    LW = 256 if W2 % 256 == 0 else (128 if W2 % 128 == 0 else W2)

    TC, NH, vmem_limit = _plan(B, C, H2, W, W2, LW,
                               x.dtype.itemsize, x.dtype.itemsize, cs)
    TH2 = H2 // NH

    # Free (contiguous) reshape: each super-row holds [even row | odd row].
    xr = x.reshape(B, C, H2, 2 * W)
    sel = _make_sel(LW, cdt)

    kernel = functools.partial(_bwt_kernel, W=W, W2=W2, LW=LW, cdt=cdt)
    cost = pl.CostEstimate(
        flops=int(B * C * H2 * (16 * W2 * LW + 2 * W + 4 * W2)),
        transcendentals=0,
        bytes_accessed=int(3 * B * C * H * W * x.dtype.itemsize
                           + sel.size * sel.dtype.itemsize),
    )

    out = pl.pallas_call(
        kernel,
        out_shape=jax.ShapeDtypeStruct((B, 8, C, H2, W2), x.dtype),
        grid_spec=pltpu.PrefetchScalarGridSpec(
            num_scalar_prefetch=0,
            grid=(B, C // TC, NH),
            in_specs=[
                # Selection matrix: constant block index -> fetched once, reused.
                pl.BlockSpec((2 * LW, 2 * LW), lambda b, c, h: (0, 0)),
                pl.BlockSpec((1, TC, TH2, 2 * W), lambda b, c, h: (b, c, h, 0)),
            ],
            # Fast path is W2 % 128 == 0 (dense lane stores); smaller W2 works
            # but each subband store is a masked vst of W2 lanes.
            out_specs=pl.BlockSpec((1, 8, TC, TH2, W2),
                                   lambda b, c, h: (b, 0, c, h, 0)),
        ),
        compiler_params=pltpu.CompilerParams(
            dimension_semantics=("parallel", "parallel", "parallel"),
            vmem_limit_bytes=vmem_limit,
        ),
        cost_estimate=cost,
    )(sel, xr)

    # Free (contiguous) reshape to the PyTorch cat(dim=1) order:
    # output channel k*C + c == subband k of input channel c.
    return out.reshape(B, 8 * C, H2, W2)


def bwt_reference(x):
    x01 = x[:, :, 0::2, :] / 2
    x02 = x[:, :, 1::2, :] / 2
    x1 = x01[:, :, :, 0::2]
    x2 = x02[:, :, :, 0::2]
    x3 = x01[:, :, :, 1::2]
    x4 = x02[:, :, :, 1::2]
    return jnp.concatenate(
        (
            x1 + x2 + x3 + x4,
            -x1 - x2 + x3 + x4,
            -x1 + x2 - x3 + x4,
            x1 - x2 - x3 + x4,
            x1 + x2 - x3 - x4,
            -x1 + x2 + x3 - x4,
            x1 - x2 + x3 - x4,
            -x1 - x2 - x3 - x4,
        ),
        axis=1,
    )


if __name__ == "__main__":
    key = jax.random.PRNGKey(0)
    x = jax.random.normal(key, (2, 4, 16, 16), dtype=jnp.float32)

    y = bwt(x)
    jax.block_until_ready(y)

    ref = bwt_reference(x)
    assert y.shape == (2, 32, 8, 8), y.shape
    assert y.dtype == x.dtype
    assert jnp.allclose(y, ref, atol=1e-5), float(jnp.max(jnp.abs(y - ref)))
    print("KERNEL_OK")
</pallas_src>

<mosaic_0001>
module attributes {stable_mosaic.version = 11 : i64} {
  func.func @_bwt_kernel(%arg0: i32, %arg1: i32, %arg2: i32, %arg3: memref<16x16xf32, #tpu.memory_space<vmem>>, %arg4: memref<1x4x8x32xf32, #tpu.memory_space<vmem>>, %arg5: memref<1x8x4x8x8xf32, #tpu.memory_space<vmem>>) attributes {dimension_semantics = [#tpu.dimension_semantics<parallel>, #tpu.dimension_semantics<parallel>, #tpu.dimension_semantics<parallel>], iteration_bounds = array<i64: 2, 1, 1>, scalar_prefetch = 0 : i64, scratch_operands = 0 : i64, tpu.core_type = #tpu.core_type<tc>, window_params = [{pipeline_mode = #tpu.pipeline_mode<synchronous>, transform_indices = @transform_0, window_bounds = array<i64: 16, 16>}, {transform_indices = @transform_1, window_bounds = array<i64: 1, 4, 8, 32>}, {transform_indices = @transform_2, window_bounds = array<i64: 1, 8, 4, 8, 8>}]} {
    %c0 = arith.constant 0 : index
    %c0_0 = arith.constant 0 : index
    %c0_1 = arith.constant 0 : index
    %c0_2 = arith.constant 0 : index
    %0 = vector.load %arg4[%c0, %c0_0, %c0_1, %c0_2] : memref<1x4x8x32xf32, #tpu.memory_space<vmem>>, vector<1x4x8x32xf32>
    %1 = vector.shape_cast %0 : vector<1x4x8x32xf32> to vector<4x8x32xf32>
    %2 = vector.shape_cast %1 : vector<4x8x32xf32> to vector<32x32xf32>
    %3 = vector.extract_strided_slice %2 {offsets = [0, 0], sizes = [32, 16], strides = [1, 1]} : vector<32x32xf32> to vector<32x16xf32>
    %4 = vector.extract_strided_slice %2 {offsets = [0, 16], sizes = [32, 16], strides = [1, 1]} : vector<32x32xf32> to vector<32x16xf32>
    %5 = arith.addf %3, %4 : vector<32x16xf32>
    %6 = arith.subf %3, %4 : vector<32x16xf32>
    %c0_3 = arith.constant 0 : index
    %c0_4 = arith.constant 0 : index
    %7 = vector.load %arg3[%c0_3, %c0_4] : memref<16x16xf32, #tpu.memory_space<vmem>>, vector<16x16xf32>
    %cst = arith.constant dense<0.000000e+00> : vector<32x16xf32>
    %8 = tpu.matmul %5, %7, %cst {dimension_numbers = #tpu.dot_dimension_numbers<[1], [0], [0], [1], [0, 0, 1, 1], [], []>} : vector<32x16xf32>, vector<16x16xf32>, vector<32x16xf32> -> vector<32x16xf32>
    %cst_5 = arith.constant dense<0.000000e+00> : vector<32x16xf32>
    %9 = tpu.matmul %6, %7, %cst_5 {dimension_numbers = #tpu.dot_dimension_numbers<[1], [0], [0], [1], [0, 0, 1, 1], [], []>} : vector<32x16xf32>, vector<16x16xf32>, vector<32x16xf32> -> vector<32x16xf32>
    %10 = vector.extract_strided_slice %8 {offsets = [0, 0], sizes = [32, 8], strides = [1, 1]} : vector<32x16xf32> to vector<32x8xf32>
    %11 = vector.extract_strided_slice %8 {offsets = [0, 8], sizes = [32, 8], strides = [1, 1]} : vector<32x16xf32> to vector<32x8xf32>
    %12 = vector.extract_strided_slice %9 {offsets = [0, 0], sizes = [32, 8], strides = [1, 1]} : vector<32x16xf32> to vector<32x8xf32>
    %13 = vector.extract_strided_slice %9 {offsets = [0, 8], sizes = [32, 8], strides = [1, 1]} : vector<32x16xf32> to vector<32x8xf32>
    %14 = vector.shape_cast %10 : vector<32x8xf32> to vector<4x8x8xf32>
    %c0_6 = arith.constant 0 : index
    %c0_7 = arith.constant 0 : index
    %c0_8 = arith.constant 0 : index
    %c0_9 = arith.constant 0 : index
    %c0_10 = arith.constant 0 : index
    %15 = vector.load %arg5[%c0_6, %c0_7, %c0_8, %c0_9, %c0_10] : memref<1x8x4x8x8xf32, #tpu.memory_space<vmem>>, vector<1x1x4x8x8xf32>
    %16 = vector.shape_cast %15 : vector<1x1x4x8x8xf32> to vector<4x8x8xf32>
    %17 = vector.shape_cast %14 : vector<4x8x8xf32> to vector<1x1x4x8x8xf32>
    tpu.vector_store %arg5[%c0_6, %c0_7, %c0_8, %c0_9, %c0_10], %17 {strides = array<i32>} : memref<1x8x4x8x8xf32, #tpu.memory_space<vmem>>, vector<1x1x4x8x8xf32>,
    %18 = vector.shape_cast %11 : vector<32x8xf32> to vector<4x8x8xf32>
    %c0_11 = arith.constant 0 : index
    %c1 = arith.constant 1 : index
    %c0_12 = arith.constant 0 : index
    %c0_13 = arith.constant 0 : index
    %c0_14 = arith.constant 0 : index
    %19 = vector.load %arg5[%c0_11, %c1, %c0_12, %c0_13, %c0_14] : memref<1x8x4x8x8xf32, #tpu.memory_space<vmem>>, vector<1x1x4x8x8xf32>
    %20 = vector.shape_cast %19 : vector<1x1x4x8x8xf32> to vector<4x8x8xf32>
    %21 = vector.shape_cast %18 : vector<4x8x8xf32> to vector<1x1x4x8x8xf32>
    tpu.vector_store %arg5[%c0_11, %c1, %c0_12, %c0_13, %c0_14], %21 {strides = array<i32>} : memref<1x8x4x8x8xf32, #tpu.memory_space<vmem>>, vector<1x1x4x8x8xf32>,
    %cst_15 = arith.constant 0.000000e+00 : f32
    %22 = vector.broadcast %cst_15 : f32 to vector<32x8xf32>
    %23 = arith.subf %22, %12 : vector<32x8xf32>
    %24 = vector.shape_cast %23 : vector<32x8xf32> to vector<4x8x8xf32>
    %c0_16 = arith.constant 0 : index
    %c2 = arith.constant 2 : index
    %c0_17 = arith.constant 0 : index
    %c0_18 = arith.constant 0 : index
    %c0_19 = arith.constant 0 : index
    %25 = vector.load %arg5[%c0_16, %c2, %c0_17, %c0_18, %c0_19] : memref<1x8x4x8x8xf32, #tpu.memory_space<vmem>>, vector<1x1x4x8x8xf32>
    %26 = vector.shape_cast %25 : vector<1x1x4x8x8xf32> to vector<4x8x8xf32>
    %27 = vector.shape_cast %24 : vector<4x8x8xf32> to vector<1x1x4x8x8xf32>
    tpu.vector_store %arg5[%c0_16, %c2, %c0_17, %c0_18, %c0_19], %27 {strides = array<i32>} : memref<1x8x4x8x8xf32, #tpu.memory_space<vmem>>, vector<1x1x4x8x8xf32>,
    %cst_20 = arith.constant 0.000000e+00 : f32
    %28 = vector.broadcast %cst_20 : f32 to vector<32x8xf32>
    %29 = arith.subf %28, %13 : vector<32x8xf32>
    %30 = vector.shape_cast %29 : vector<32x8xf32> to vector<4x8x8xf32>
    %c0_21 = arith.constant 0 : index
    %c3 = arith.constant 3 : index
    %c0_22 = arith.constant 0 : index
    %c0_23 = arith.constant 0 : index
    %c0_24 = arith.constant 0 : index
    %31 = vector.load %arg5[%c0_21, %c3, %c0_22, %c0_23, %c0_24] : memref<1x8x4x8x8xf32, #tpu.memory_space<vmem>>, vector<1x1x4x8x8xf32>
    %32 = vector.shape_cast %31 : vector<1x1x4x8x8xf32> to vector<4x8x8xf32>
    %33 = vector.shape_cast %30 : vector<4x8x8xf32> to vector<1x1x4x8x8xf32>
    tpu.vector_store %arg5[%c0_21, %c3, %c0_22, %c0_23, %c0_24], %33 {strides = array<i32>} : memref<1x8x4x8x8xf32, #tpu.memory_space<vmem>>, vector<1x1x4x8x8xf32>,
    %cst_25 = arith.constant 0.000000e+00 : f32
    %34 = vector.broadcast %cst_25 : f32 to vector<32x8xf32>
    %35 = arith.subf %34, %11 : vector<32x8xf32>
    %36 = vector.shape_cast %35 : vector<32x8xf32> to vector<4x8x8xf32>
    %c0_26 = arith.constant 0 : index
    %c4 = arith.constant 4 : index
    %c0_27 = arith.constant 0 : index
    %c0_28 = arith.constant 0 : index
    %c0_29 = arith.constant 0 : index
    %37 = vector.load %arg5[%c0_26, %c4, %c0_27, %c0_28, %c0_29] : memref<1x8x4x8x8xf32, #tpu.memory_space<vmem>>, vector<1x1x4x8x8xf32>
    %38 = vector.shape_cast %37 : vector<1x1x4x8x8xf32> to vector<4x8x8xf32>
    %39 = vector.shape_cast %36 : vector<4x8x8xf32> to vector<1x1x4x8x8xf32>
    tpu.vector_store %arg5[%c0_26, %c4, %c0_27, %c0_28, %c0_29], %39 {strides = array<i32>} : memref<1x8x4x8x8xf32, #tpu.memory_space<vmem>>, vector<1x1x4x8x8xf32>,
    %40 = vector.shape_cast %13 : vector<32x8xf32> to vector<4x8x8xf32>
    %c0_30 = arith.constant 0 : index
    %c5 = arith.constant 5 : index
    %c0_31 = arith.constant 0 : index
    %c0_32 = arith.constant 0 : index
    %c0_33 = arith.constant 0 : index
    %41 = vector.load %arg5[%c0_30, %c5, %c0_31, %c0_32, %c0_33] : memref<1x8x4x8x8xf32, #tpu.memory_space<vmem>>, vector<1x1x4x8x8xf32>
    %42 = vector.shape_cast %41 : vector<1x1x4x8x8xf32> to vector<4x8x8xf32>
    %43 = vector.shape_cast %40 : vector<4x8x8xf32> to vector<1x1x4x8x8xf32>
    tpu.vector_store %arg5[%c0_30, %c5, %c0_31, %c0_32, %c0_33], %43 {strides = array<i32>} : memref<1x8x4x8x8xf32, #tpu.memory_space<vmem>>, vector<1x1x4x8x8xf32>,
    %44 = vector.shape_cast %12 : vector<32x8xf32> to vector<4x8x8xf32>
    %c0_34 = arith.constant 0 : index
    %c6 = arith.constant 6 : index
    %c0_35 = arith.constant 0 : index
    %c0_36 = arith.constant 0 : index
    %c0_37 = arith.constant 0 : index
    %45 = vector.load %arg5[%c0_34, %c6, %c0_35, %c0_36, %c0_37] : memref<1x8x4x8x8xf32, #tpu.memory_space<vmem>>, vector<1x1x4x8x8xf32>
    %46 = vector.shape_cast %45 : vector<1x1x4x8x8xf32> to vector<4x8x8xf32>
    %47 = vector.shape_cast %44 : vector<4x8x8xf32> to vector<1x1x4x8x8xf32>
    tpu.vector_store %arg5[%c0_34, %c6, %c0_35, %c0_36, %c0_37], %47 {strides = array<i32>} : memref<1x8x4x8x8xf32, #tpu.memory_space<vmem>>, vector<1x1x4x8x8xf32>,
    %cst_38 = arith.constant 0.000000e+00 : f32
    %48 = vector.broadcast %cst_38 : f32 to vector<32x8xf32>
    %49 = arith.subf %48, %10 : vector<32x8xf32>
    %50 = vector.shape_cast %49 : vector<32x8xf32> to vector<4x8x8xf32>
    %c0_39 = arith.constant 0 : index
    %c7 = arith.constant 7 : index
    %c0_40 = arith.constant 0 : index
    %c0_41 = arith.constant 0 : index
    %c0_42 = arith.constant 0 : index
    %51 = vector.load %arg5[%c0_39, %c7, %c0_40, %c0_41, %c0_42] : memref<1x8x4x8x8xf32, #tpu.memory_space<vmem>>, vector<1x1x4x8x8xf32>
    %52 = vector.shape_cast %51 : vector<1x1x4x8x8xf32> to vector<4x8x8xf32>
    %53 = vector.shape_cast %50 : vector<4x8x8xf32> to vector<1x1x4x8x8xf32>
    tpu.vector_store %arg5[%c0_39, %c7, %c0_40, %c0_41, %c0_42], %53 {strides = array<i32>} : memref<1x8x4x8x8xf32, #tpu.memory_space<vmem>>, vector<1x1x4x8x8xf32>,
    return
  }
  func.func @transform_0(%arg0: i32, %arg1: i32, %arg2: i32) -> (i32, i32) {
    %c0_i32 = arith.constant 0 : i32
    %c0_i32_0 = arith.constant 0 : i32
    %c0_i32_1 = arith.constant 0 : i32
    return %c0_i32, %c0_i32_0 : i32, i32
  }
  func.func @transform_1(%arg0: i32, %arg1: i32, %arg2: i32) -> (i32, i32, i32, i32) {
    %c0_i32 = arith.constant 0 : i32
    %c0_i32_0 = arith.constant 0 : i32
    return %arg0, %arg1, %arg2, %c0_i32 : i32, i32, i32, i32
  }
  func.func @transform_2(%arg0: i32, %arg1: i32, %arg2: i32) -> (i32, i32, i32, i32, i32) {
    %c0_i32 = arith.constant 0 : i32
    %c0_i32_0 = arith.constant 0 : i32
    %c0_i32_1 = arith.constant 0 : i32
    return %arg0, %c0_i32, %arg1, %arg2, %c0_i32_0 : i32, i32, i32, i32, i32
  }
}

</mosaic_0001>

<bundles_post_ra>
// kernel: tpu_custom_call.1
= control target key start
LH: loop header
LB: loop body
LE: loop exit
PB: predicated region body
PF: predicated region fallthrough
CT: control target
= control target key end

     0   :  { %7 = vsyncpa [#allocation3], 0  ;;  %s1328_s0 = inlined_call_operand.hbm [shape: f32[16,16], index: 0, kind: input, shape index: {}]   ;;  %s1329_s1 = inlined_call_operand.hbm [shape: f32[2,4,8,32], index: 1, kind: input, shape index: {}]   ;;  %s1330_s2 = inlined_call_operand.hbm [shape: f32[2,8,4,8,8], index: 2, kind: output, shape index: {}]  }
   0x1   :  { %8 = vsyncpa [#allocation6], 0 }
   0x2   :  { %10 = vsyncpa [#allocation6 + $0x1], 0 }
   0x3   :  { %11 = vsyncpa [#allocation4], 0 }
   0x4   :  { %13 = vsyncpa [#allocation4 + $0x1], 0  ;;  %s1011_s9 = smov 0   ;;  %s1013_s10 = smov 0  }
   0x5   :  { %s1015_s11 = smov 0   ;;  %s1017_s12 = smov 0  }
   0x6   :  { %s1019_s13 = smov 0   ;;  %s1021_s14 = smov 0  }
   0x7 LB: > { %s667_s15 = sadd.s32 4294967295, %s985_s14   ;;  %s668_s16 = sadd.s32 4294967294, %s985_s14   ;;  %s985_s14 = sphi %s1021_s14, %s19_s14   ;;  %s981_s13 = sphi %s1019_s13, %s1354_s13   ;;  %s977_s12 = sphi %s1017_s12, %s1353_s12   ;;  %s973_s11 = sphi %s1015_s11, %s1352_s11   ;;  %s969_s10 = sphi %s1013_s10, %s1351_s10   ;;  %s965_s9 = sphi %s1011_s9, %s1350_s9  }
   0x8   : > { %p83_p0 = scmp.ne.s32.totalorder %s969_s10, %s965_s9  ;;  %p1045_p1 = scmp.eq.s32.totalorder %s667_s15, 0 }
   0x9   : > { %p1049_p2 = scmp.eq.s32.totalorder %s667_s15, 1  ;;  %p117_p3 = scmp.eq.s32.totalorder %s668_s16, 1 }
   0xa   : > { %s1335_s17 = scalar_select %p1045_p1, 1, 0 }
   0xb   : > { %s1336_s18 = scalar_select %p1049_p2, 1, 0 }
   0xc   : > { %p1055_p4 = por %p1045_p1, %p83_p0  ;;  %p669_p5 = scmp.ge.s32.totalorder %s985_s14, 1 }
   0xd   : > { %p1060_p6 = por %p117_p3, %p83_p0  ;;  %p124_p7 = scmp.lt.s32.totalorder %s985_s14, 3 }
   0xe   : > { %s1337_s19 = scalar_select %p1055_p4, 1, 0 }
   0xf   : > { %s1338_s20 = scalar_select %p1060_p6, 1, 0 }
  0x10   : > { %p1065_p8 = pnand %p669_p5, %p124_p7  ;;  %s987_s22 = smov [#allocation2]  }
  0x11   : > { %s136_s23 = sshll.u32 %s987_s22, 4  ;;  %s38_s25 = sadd.s32 1, %s981_s13  ;;  %s137_s23 = int_to_ptr.vmem [resolvable:$true] %s136_s23 }
  0x12   : > { %s1339_s21 = scalar_select %p1065_p8, 1, 0 }
  0x13   : > { %p770_p9 = pneg %p1065_p8  ;;  %s841_s28 = scalar_lea.hbm %s1328_s0, 256 }
  0x14   : > { %p842_p12 = scmp.ne.s32.totalorder %s1328_s0, %s841_s28  ;;  %p848_p5 = scmp.lt.u32.totalorder %s841_s28, %s1328_s0 }
  0x15   : > { %p1074_p11 = pnand %p770_p9, %p1045_p1 }
  0x17   : > { %p843_p13 = pneg %p1074_p11 }
  0x19   : > { %p844_p0 = pnand %p843_p13, %p842_p12 }
  0x1b   : > { %p845_p3 = pneg %p844_p0 }
  0x1d   : > { %p850_p7 = pnand %p848_p5, %p845_p3 }
  0x1f   : > { %853 = shalt.err (!%p850_p7)
}
  0x20   : > { %s854_s5 = scalar_lea.vmem %s137_s23, 256  ;;  %p862_p4 = scmp.lt.s32.totalorder %s137_s23, %s137_s23 }
  0x21   : > { %p855_p9 = scmp.ne.s32.totalorder %s137_s23, %s854_s5  ;;  %p863_p1 = scmp.lt.s32.totalorder %s854_s5, %s854_s5 }
  0x23   : > { %p857_p10 = pnand %p855_p9, %p843_p13  ;;  %p864_p8 = por %p863_p1, %p862_p4 }
  0x25   : > { %p858_p6 = pneg %p857_p10 }
  0x27   : > { %p865_p2 = pnand %p864_p8, %p858_p6 }
  0x29   : > { %868 = shalt.err (!%p865_p2)
}
  0x2a   : > { %s988_s6 = smov 128   ;;  %s989_s7 = smov 8  }
  0x2b   : > { %773 = dma.hbm_to_vmem [thread:$0]  (!%p1074_p11), %s1328_s0, 256, %s137_s23, [#allocation3], %s988_s6, %s988_s6, %s989_s7  }
  0x2c   : > { %p40_p1 = scmp.ge.s32.totalorder %s38_s25, 2  ;;  %s70_s16 = sadd.s32 1, %s973_s11 }
  0x2d   : > { %p77_p2 = scmp.ne.s32.totalorder %s973_s11, %s969_s10  ;;  %p78_p4 = scmp.eq.s32.totalorder %s985_s14, 0 }
  0x2e   : > { %s1356_s25 = smov (%p40_p1, %s38_s25), 0  ;;  %p1342_p8 = scmp.ne.s32.totalorder %s1336_s18, 0 }
  0x2f   : > { %p1104_p6 = por %p78_p4, %p77_p2  ;;  %s63_s26 = ssub.s32 %s981_s13, %s1356_s25 }
  0x30   : > { %p1110_p10 = por %p1342_p8, %p77_p2  ;;  %p783_p12 = scmp.lt.s32.totalorder %s985_s14, 2 }
  0x31   : > { %p68_p11 = scmp.eq.s32.totalorder %s63_s26, 0  ;;  %s150_s23 = sand.u32 1, %s973_s11  }
  0x32   : > { %s672_s27 = sshll.u32 %s150_s23, 5  ;;  %s720_s29 = sshll.u32 %s981_s13, 9 }
  0x33   : > { %s1119_s28 = scalar_select %p68_p11, %s973_s11, %s70_s16  }
  0x34   : > { %s1125_s4 = scalar_lea.hbm %s1329_s1, %s720_s29  ;;  %s154_s18 = scalar_lea.vmem [#allocation5], %s672_s27 }
  0x35   : > { %s164_s5 = sshll.u32 %s154_s18, 4  ;;  %p1131_p13 = pnand %p783_p12, %p1104_p6  ;;  %s1127_s5 = int_to_ptr.vmem [resolvable:$true] %s164_s5 }
  0x36   : > { %s1135_s15 = scalar_lea.sflag [#allocation6], %s150_s23  ;;  %s869_s16 = scalar_lea.hbm %s1125_s4, 512 }
  0x37   : > { %p870_p0 = scmp.ne.s32.totalorder %s1125_s4, %s869_s16  ;;  %p871_p3 = pneg %p1131_p13 }
  0x38   : > { %s874_s22 = scalar_lea.hbm %s1329_s1, 1024  ;;  %p875_p9 = scmp.lt.u32.totalorder %s1125_s4, %s1329_s1 }
  0x39   : > { %p872_p5 = pnand %p871_p3, %p870_p0  ;;  %p876_p1 = scmp.lt.u32.totalorder %s874_s22, %s869_s16 }
  0x3a   : > { %p878_p4 = scmp.lt.u32.totalorder %s869_s16, %s1125_s4 }
  0x3b   : > { %p873_p7 = pneg %p872_p5  ;;  %p877_p2 = por %p876_p1, %p875_p9 }
  0x3d   : > { %p879_p6 = por %p878_p4, %p877_p2 }
  0x3f   : > { %p880_p8 = pnand %p879_p6, %p873_p7 }
  0x41   : > { %883 = shalt.err (!%p880_p8)
}
  0x42   : > { %s884_s23 = scalar_lea.vmem %s1127_s5, 512  ;;  %s990_s3 = smov [#allocation5]  }
  0x43   : > { %p885_p12 = scmp.ne.s32.totalorder %s1127_s5, %s884_s23  ;;  %s889_s18 = sshll.u32 %s990_s3, 4  ;;  %s890_s18 = int_to_ptr.vmem [resolvable:$false] %s889_s18 }
  0x44   : > { %s891_s26 = scalar_lea.vmem %s890_s18, 1024  ;;  %p892_p5 = scmp.lt.s32.totalorder %s1127_s5, %s890_s18 }
  0x45   : > { %p887_p11 = pnand %p885_p12, %p871_p3  ;;  %p893_p9 = scmp.lt.s32.totalorder %s891_s26, %s884_s23 }
  0x47   : > { %p888_p0 = pneg %p887_p11  ;;  %p894_p1 = por %p893_p9, %p892_p5 }
  0x49   : > { %p895_p2 = pnand %p894_p1, %p888_p0 }
  0x4b   : > { %898 = shalt.err (!%p895_p2)
}
  0x4c   : > { %777 = dma.hbm_to_vmem [thread:$0]  (!%p1131_p13), %s1125_s4, 512, %s1127_s5, %s1135_s15, %s988_s6, %s988_s6, %s989_s7  }
  0x4d   : > { %p1345_p3 = scmp.ne.s32.totalorder %s1339_s21, 0 }
  0x4e   : > { %p1346_p7 = scmp.ne.s32.totalorder (!%p1345_p3), %s1335_s17, 0 }
  0x4f   : > { %176 = sbr.rel (%p1345_p3) target bundleno = 584 (0x248), region = 28 }
  0x56   : > { %952 = dma.done.wait (%p1346_p7), [#allocation3], 256  }
  0x57   : > { %954 = vsyncadd (%p1346_p7), [#allocation3], 4294967040  ;;  %s1173_s16 = sand.u32 1, %s969_s10   ;;  %p1347_p4 = scmp.ne.s32.totalorder %s1337_s19, 0 }
  0x58   : > { %s677_s8 = sshll.u32 %s1173_s16, 5  ;;  %s183_s27 = scalar_lea.sflag [#allocation6], %s1173_s16 }
  0x59   : > { %s186_s22 = scalar_lea.vmem [#allocation5], %s677_s8 }
  0x5a   : > { %956 = dma.done.wait (%p1347_p4), %s183_s27, 512  }
  0x5b   : > { %958 = vsyncadd (%p1347_p4), %s183_s27, 4294966784  ;;  %v209_v0 = vld [vmem:[%s186_s22] sm:$0xff]  ;;  %v211_v1 = vld [vmem:[%s186_s22 + $0x10] sm:$0xff]  ;;  %s991_s21 = smov 112   ;;  %vm239_vm0 = vcmask 130048   ;;  %s678_s17 = sshll.u32 %s1173_s16, 8 }
  0x5c   : > { %217 = vrot.lane.b32.xlu0 %v209_v0, %s991_s21  ;;  %221 = vrot.lane.b32.xlu1 %v211_v1, %s991_s21  ;;  %v237_v2 = vld [vmem:[#allocation2] sm:$0xff]  ;;  %v238_v3 = vld [vmem:[#allocation2 + $0x8] sm:$0xff]  ;;  %v210_v4 = vld [vmem:[%s186_s22 + $0x8] sm:$0xff]  ;;  %vm434_vm1 = vcmask 64512   ;;  %s1190_s19 = scalar_lea.vmem [#allocation7], %s678_s17  ;;  %s992_s6 = smov 120  }
  0x5d   : > { %v212_v5 = vld [vmem:[%s186_s22 + $0x18] sm:$0xff]  ;;  %v754_v6 = vpack.c.bf16 %v238_v3, %v237_v2  ;;  %s721_s7 = sshll.u32 %s977_s12, 12  ;;  %s563_s4 = sshll.u32 %s1190_s19, 4  ;;  %s1275_s4 = int_to_ptr.vmem [resolvable:$true] %s563_s4 }
  0x5e   : > { %s1273_s29 = scalar_lea.hbm %s1330_s2, %s721_s7  ;;  %s547_s12 = scalar_lea.sflag [#allocation4], %s1173_s16 }
  0x5f   : > { %755 = vmatprep.subr.bf16.mxu0 %v754_v6  ;;  %759 = vmatprep.subr.bf16.mxu1 %v754_v6  ;;  %s899_s30 = scalar_lea.vmem %s1275_s4, 4096  ;;  %s993_s23 = smov [#allocation7]  }
  0x60   : > { %219 = vrot.lane.b32.xlu0 %v210_v4, %s991_s21  ;;  %223 = vrot.lane.b32.xlu1 %v212_v5, %s991_s21  ;;  %p900_p13 = scmp.ne.s32.totalorder %s1275_s4, %s899_s30  ;;  %s903_s3 = sshll.u32 %s993_s23, 4  ;;  %s904_s3 = int_to_ptr.vmem [resolvable:$false] %s903_s3 }
  0x61   : > { %757 = vmatpush3.bf16.msra.mxu0 %v754_v6  ;;  %761 = vmatpush3.bf16.msra.mxu1 %v754_v6  ;;  %s905_s18 = scalar_lea.vmem %s904_s3, 8192  ;;  %p906_p12 = scmp.lt.s32.totalorder %s1275_s4, %s904_s3 }
  0x62   : > { %p901_p6 = pnand %p900_p13, %p1110_p10  ;;  %p907_p11 = scmp.lt.s32.totalorder %s905_s18, %s899_s30 }
  0x64   : > { %p902_p8 = pneg %p901_p6  ;;  %p908_p0 = por %p907_p11, %p906_p12 }
  0x66   : > { %p909_p5 = pnand %p908_p0, %p902_p8 }
  0xce   : > { %v218_v7 = vpop.permute.xlu0 %217  ;;  %v222_v8 = vpop.permute.xlu1 %221 }
  0xcf   : > { %v229_v9 = vadd.f32 %v218_v7, %v209_v0  ;;  %v233_v10 = vsub.f32 %v209_v0, %v218_v7  ;;  %v231_v12 = vadd.f32 %v222_v8, %v211_v1  ;;  %v235_v13 = vsub.f32 %v211_v1, %v222_v8 }
  0xd1   : > { %738 = vmatprep.mubr.msk.f32.mxu0 %vm239_vm0, %v229_v9  ;;  %748 = vmatprep.mubr.msk.f32.mxu1 %vm239_vm0, %v233_v10 }
  0xd2   : > { %v220_v11 = vpop.permute.xlu0 %219  ;;  %v224_v14 = vpop.permute.xlu1 %223 }
  0xd3   : > { %v230_v15 = vadd.f32 %v220_v11, %v210_v4  ;;  %v234_v16 = vsub.f32 %v210_v4, %v220_v11  ;;  %v232_v17 = vadd.f32 %v224_v14, %v212_v5  ;;  %v236_v18 = vsub.f32 %v212_v5, %v224_v14 }
  0xd5   : > { %739 = vmatmul.mubr.msk.f32.vlgmr.msra.gmra.mrb[0].mxu0 %vm239_vm0, %v230_v15  ;;  %749 = vmatmul.mubr.msk.f32.vlgmr.msra.gmra.mrb[0].mxu1 %vm239_vm0, %v234_v16 }
  0xd6   : > { %741 = vmatprep.mubr.msk.f32.mxu0 %vm239_vm0, %v231_v12  ;;  %751 = vmatprep.mubr.msk.f32.mxu1 %vm239_vm0, %v235_v13 }
  0xd9   : > { %742 = vmatmul.mubr.msk.f32.gmra.mrb[2].mxu0 %vm239_vm0, %v232_v17  ;;  %752 = vmatmul.mubr.msk.f32.gmra.mrb[2].mxu1 %vm239_vm0, %v236_v18 }
 0x1a8   : > { %v740_v19 = vpop.f32.mrb[0].mxu0  ;;  %v750_v20 = vpop.f32.mrb[0].mxu1 }
 0x1a9   : > { %436 = vst.msk [vmem:[%s1190_s19 + $0x8] sm:$0xff] %vm434_vm1, %v740_v19  ;;  %v491_v21 = vsub.f32 0.0, %v740_v19  ;;  %v461_v22 = vsub.f32 0.0, %v750_v20  ;;  %708 = vst.msk [vmem:[%s1190_s19 + $0xc8] sm:$0xff] %vm434_vm1, %v750_v20  ;;  %445 = vrot.lane.b32.xlu1 %v740_v19, %s992_s6  ;;  %v318_v23 = vpop.f32.mrb[1].mxu0  ;;  %v415_v24 = vpop.f32.mrb[1].mxu1 }
 0x1aa   : > { %435 = vst.msk [vmem:[%s1190_s19] sm:$0xff] %vm434_vm1, %v318_v23  ;;  %v490_v25 = vsub.f32 0.0, %v318_v23  ;;  %v460_v26 = vsub.f32 0.0, %v415_v24  ;;  %707 = vst.msk [vmem:[%s1190_s19 + $0xc0] sm:$0xff] %vm434_vm1, %v415_v24  ;;  %443 = vrot.lane.b32.xlu0 %v318_v23, %s992_s6 }
 0x1ab   : > { %712 = vst.msk [vmem:[%s1190_s19 + $0xe8] sm:$0xff] %vm434_vm1, %v491_v21  ;;  %692 = vst.msk [vmem:[%s1190_s19 + $0x48] sm:$0xff] %vm434_vm1, %v461_v22 }
 0x1ac   : > { %711 = vst.msk [vmem:[%s1190_s19 + $0xe0] sm:$0xff] %vm434_vm1, %v490_v25  ;;  %691 = vst.msk [vmem:[%s1190_s19 + $0x40] sm:$0xff] %vm434_vm1, %v460_v26  ;;  %v743_v27 = vpop.f32.mrb[2].mxu0  ;;  %v753_v28 = vpop.f32.mrb[2].mxu1 }
 0x1ad   : > { %521 = vrot.lane.b32.xlu1 %v750_v20, %s992_s6  ;;  %438 = vst.msk [vmem:[%s1190_s19 + $0x18] sm:$0xff] %vm434_vm1, %v743_v27  ;;  %v493_v29 = vsub.f32 0.0, %v743_v27  ;;  %v463_v30 = vsub.f32 0.0, %v753_v28  ;;  %710 = vst.msk [vmem:[%s1190_s19 + $0xd8] sm:$0xff] %vm434_vm1, %v753_v28  ;;  %v328_v31 = vpop.f32.mrb[3].mxu0  ;;  %v425_v32 = vpop.f32.mrb[3].mxu1 }
 0x1ae   : > { %519 = vrot.lane.b32.xlu0 %v415_v24, %s992_s6  ;;  %437 = vst.msk [vmem:[%s1190_s19 + $0x10] sm:$0xff] %vm434_vm1, %v328_v31  ;;  %v492_v33 = vsub.f32 0.0, %v328_v31  ;;  %v462_v34 = vsub.f32 0.0, %v425_v32  ;;  %709 = vst.msk [vmem:[%s1190_s19 + $0xd0] sm:$0xff] %vm434_vm1, %v425_v32 }
 0x1af   : > { %714 = vst.msk [vmem:[%s1190_s19 + $0xf8] sm:$0xff] %vm434_vm1, %v493_v29  ;;  %694 = vst.msk [vmem:[%s1190_s19 + $0x58] sm:$0xff] %vm434_vm1, %v463_v30 }
 0x1b0   : > { %713 = vst.msk [vmem:[%s1190_s19 + $0xf0] sm:$0xff] %vm434_vm1, %v492_v33  ;;  %693 = vst.msk [vmem:[%s1190_s19 + $0x50] sm:$0xff] %vm434_vm1, %v462_v34 }
 0x1b1   : > { %475 = vrot.lane.b32.xlu1 %v461_v22, %s992_s6 }
 0x1b2   : > { %473 = vrot.lane.b32.xlu0 %v460_v26, %s992_s6 }
 0x1b5   : > { %500 = vrot.lane.b32.xlu1 %v491_v21, %s992_s6 }
 0x1b6   : > { %498 = vrot.lane.b32.xlu0 %v490_v25, %s992_s6 }
 0x1b9   : > { %449 = vrot.lane.b32.xlu1 %v743_v27, %s992_s6 }
 0x1ba   : > { %447 = vrot.lane.b32.xlu0 %v328_v31, %s992_s6 }
 0x1bd   : > { %479 = vrot.lane.b32.xlu1 %v463_v30, %s992_s6 }
 0x1be   : > { %477 = vrot.lane.b32.xlu0 %v462_v34, %s992_s6 }
 0x1c1   : > { %504 = vrot.lane.b32.xlu1 %v493_v29, %s992_s6 }
 0x1c2   : > { %502 = vrot.lane.b32.xlu0 %v492_v33, %s992_s6 }
 0x1c5   : > { %525 = vrot.lane.b32.xlu1 %v753_v28, %s992_s6 }
 0x1c6   : > { %523 = vrot.lane.b32.xlu0 %v425_v32, %s992_s6 }
 0x21b   : > { %v446_v35 = vpop.permute.xlu1 %445 }
 0x21c   : > { %688 = vst.msk [vmem:[%s1190_s19 + $0x28] sm:$0xff] %vm434_vm1, %v446_v35  ;;  %v444_v36 = vpop.permute.xlu0 %443 }
 0x21d   : > { %687 = vst.msk [vmem:[%s1190_s19 + $0x20] sm:$0xff] %vm434_vm1, %v444_v36 }
 0x21f   : > { %v522_v37 = vpop.permute.xlu1 %521 }
 0x220   : > { %704 = vst.msk [vmem:[%s1190_s19 + $0xa8] sm:$0xff] %vm434_vm1, %v522_v37  ;;  %v520_v38 = vpop.permute.xlu0 %519 }
 0x221   : > { %703 = vst.msk [vmem:[%s1190_s19 + $0xa0] sm:$0xff] %vm434_vm1, %v520_v38 }
 0x223   : > { %v476_v39 = vpop.permute.xlu1 %475 }
 0x224   : > { %696 = vst.msk [vmem:[%s1190_s19 + $0x68] sm:$0xff] %vm434_vm1, %v476_v39  ;;  %v474_v40 = vpop.permute.xlu0 %473 }
 0x225   : > { %695 = vst.msk [vmem:[%s1190_s19 + $0x60] sm:$0xff] %vm434_vm1, %v474_v40 }
 0x227   : > { %v501_v41 = vpop.permute.xlu1 %500 }
 0x228   : > { %700 = vst.msk [vmem:[%s1190_s19 + $0x88] sm:$0xff] %vm434_vm1, %v501_v41  ;;  %v499_v42 = vpop.permute.xlu0 %498 }
 0x229   : > { %699 = vst.msk [vmem:[%s1190_s19 + $0x80] sm:$0xff] %vm434_vm1, %v499_v42 }
 0x22b   : > { %v450_v43 = vpop.permute.xlu1 %449 }
 0x22c   : > { %690 = vst.msk [vmem:[%s1190_s19 + $0x38] sm:$0xff] %vm434_vm1, %v450_v43  ;;  %v448_v44 = vpop.permute.xlu0 %447 }
 0x22d   : > { %689 = vst.msk [vmem:[%s1190_s19 + $0x30] sm:$0xff] %vm434_vm1, %v448_v44 }
 0x22f   : > { %v480_v45 = vpop.permute.xlu1 %479 }
 0x230   : > { %698 = vst.msk [vmem:[%s1190_s19 + $0x78] sm:$0xff] %vm434_vm1, %v480_v45  ;;  %v478_v46 = vpop.permute.xlu0 %477 }
 0x231   : > { %697 = vst.msk [vmem:[%s1190_s19 + $0x70] sm:$0xff] %vm434_vm1, %v478_v46 }
 0x233   : > { %v505_v47 = vpop.permute.xlu1 %504 }
 0x234   : > { %702 = vst.msk [vmem:[%s1190_s19 + $0x98] sm:$0xff] %vm434_vm1, %v505_v47  ;;  %v503_v48 = vpop.permute.xlu0 %502 }
 0x235   : > { %701 = vst.msk [vmem:[%s1190_s19 + $0x90] sm:$0xff] %vm434_vm1, %v503_v48 }
 0x237   : > { %v526_v49 = vpop.permute.xlu1 %525 }
 0x238   : > { %706 = vst.msk [vmem:[%s1190_s19 + $0xb8] sm:$0xff] %vm434_vm1, %v526_v49  ;;  %v524_v50 = vpop.permute.xlu0 %523 }
 0x239   : > { %705 = vst.msk [vmem:[%s1190_s19 + $0xb0] sm:$0xff] %vm434_vm1, %v524_v50 }
 0x23a   : > { %912 = shalt.err (!%p909_p5)
}
 0x23b   : > { %s913_s26 = scalar_lea.hbm %s1273_s29, 4096  ;;  %s917_s22 = scalar_lea.hbm %s1330_s2, 8192 }
 0x23c   : > { %p914_p9 = scmp.ne.s32.totalorder %s1273_s29, %s913_s26  ;;  %p918_p3 = scmp.lt.u32.totalorder %s1273_s29, %s1330_s2 }
 0x23d   : > { %p919_p7 = scmp.lt.u32.totalorder %s917_s22, %s913_s26  ;;  %p921_p13 = scmp.lt.u32.totalorder %s913_s26, %s1273_s29 }
 0x23e   : > { %p915_p1 = pnand %p914_p9, %p1110_p10 }
 0x23f   : > { %p920_p4 = por %p919_p7, %p918_p3 }
 0x240   : > { %p916_p2 = pneg %p915_p1 }
 0x241   : > { %p922_p6 = por %p921_p13, %p920_p4 }
 0x243   : > { %p923_p8 = pnand %p922_p6, %p916_p2 }
 0x245   : > { %926 = shalt.err (!%p923_p8)
}
 0x246   : > { %s994_s19 = smov 128   ;;  %s995_s6 = smov 8  }
 0x247   : > { %768 = dma.vmem_to_hbm [thread:$0]  (%p1110_p10), %s1275_s4, 4096, %s1273_s29, %s547_s12, %s994_s19, %s994_s19, %s995_s6  }
 0x248 PF: > { %s578_s7 = sand.u32 1, %s965_s9   ;;  %p1348_p12 = scmp.ne.s32.totalorder %s1338_s20, 0 }
 0x249   : > { %p1349_p11 = scmp.ge.s32.totalorder %s985_s14, 2  ;;  %s579_s5 = scalar_lea.sflag [#allocation4], %s578_s7 }
 0x24b   : > { %p779_p0 = pnand %p1349_p11, %p1348_p12 }
 0x24d   : > { %960 = dma.done.wait (!%p779_p0), %s579_s5, 4096  }
 0x24e   : > { %962 = vsyncadd (!%p779_p0), %s579_s5, 4294963200  ;;  %s19_s14 = sadd.s32 1, %s985_s14   ;;  %s1350_s9 = smov %s969_s10 }
 0x24f   : > { %p16_p5 = scmp.ge.s32.totalorder %s19_s14, 4   ;;  %s1351_s10 = smov %s973_s11 }
 0x250   : > { %s1352_s11 = smov %s1119_s28  ;;  %s1353_s12 = smov %s981_s13 }
 0x251   : > { %s1354_s13 = smov %s1356_s25  ;;  %18 = sbr.rel (!%p16_p5) target bundleno = 7 (0x7), region = 85 }
 0x258   :  { %584 = vsyncpa [#allocation3], 1 }
 0x259   :  { %586 = vsyncpa [#allocation3 + $0x1], 1 }
 0x25a   :  { %587 = vsyncpa [#allocation6], 1 }
 0x25b   :  { %589 = vsyncpa [#allocation6 + $0x1], 1 }
 0x25c   :  { %590 = vsyncpa [#allocation4], 1 }
 0x25d   :  { %592 = vsyncpa [#allocation4 + $0x1], 1 }

</bundles_post_ra>
